<compile_context>
chip_gen: v7x
topology: tpu7x:2x2x1
jax: 0.10.0
libtpu: 0.0.40
codegen_flags: <defaults>
</compile_context>

<pallas_src>
import functools

import jax
import jax.numpy as jnp
from jax.experimental import pallas as pl
from jax.experimental.pallas import tpu as pltpu

_LANES = 128  # every slab block is padded to 128 lanes (one full vreg lane span)


# ----------------------------------------------------------------------------
# Kernel
# ----------------------------------------------------------------------------
def _mlp_context_encoder_kernel(input_dim, inv_seq_len, seq_num, offs,
                                x_ref, slab_ref, out_ref):
    """Whole MLPContextEncoder.forward in one kernel invocation (no grid).

    All parameter blocks live in one VMEM slab; slices below are static,
    8-row-aligned, full-lane-width views (zero relayout cost).
    """
    x = x_ref[...]                                              # (N, input_dim)

    w1 = slab_ref[offs["w1"]: offs["w1"] + input_dim, :]        # (input_dim, 128)
    b1 = slab_ref[offs["b1"]: offs["b1"] + 1, :]                # (1, 128)
    w2 = slab_ref[offs["w2"]: offs["w2"] + _LANES, :]           # (128, 128)
    b2 = slab_ref[offs["b2"]: offs["b2"] + 1, :]
    w3 = slab_ref[offs["w3"]: offs["w3"] + _LANES, :]
    b3 = slab_ref[offs["b3"]: offs["b3"] + 1, :]
    wh = slab_ref[offs["wh"]: offs["wh"] + _LANES, :]
    bh = slab_ref[offs["bh"]: offs["bh"] + 1, :]

    # trans_enc first Linear + ReLU over all N tokens at once.
    h1 = jnp.maximum(
        jnp.dot(x, w1, preferred_element_type=jnp.float32) + b1, 0.0)   # (N, 128)

    # Pool before the second Linear (sum over tokens is linear):
    #   sum_i mean_t(trans_enc(x_it))
    #     = (1/seq_len) * (sum_tokens relu(x@w1+b1)) @ w2 + seq_num * b2
    # Exact for equal-length trajectories (same assumption as sample_contexts).
    p = jnp.sum(h1, axis=0, keepdims=True)                              # (1, 128)
    pooled = (jnp.dot(p, w2, preferred_element_type=jnp.float32) * inv_seq_len
              + b2 * float(seq_num))                                    # (1, 128)

    # aggregator: Linear -> ReLU.
    hid = jnp.maximum(
        jnp.dot(pooled, w3, preferred_element_type=jnp.float32) + b3, 0.0)

    # Fused heads: one (1,128)x(128,128) matmul; lane-dense output
    # [mean (out) | log_std (out) | zeros].
    out_ref[...] = jnp.dot(hid, wh, preferred_element_type=jnp.float32) + bh


# ----------------------------------------------------------------------------
# Parameter slab packing (host side, once)
# ----------------------------------------------------------------------------
def _pad_block(a, rows, cols=_LANES):
    out = jnp.zeros((rows, cols), jnp.float32)
    return out.at[: a.shape[0], : a.shape[1]].set(a.astype(jnp.float32))


def pack_param_slab(params, input_dim):
    """Pack all weights/biases into one tile-aligned (rows, 128) f32 slab.

    Zero-padding makes every matmul in the kernel full-lane-width while
    remaining numerically exact (padded rows/cols contribute zeros).
    Returns (slab, {name: static row offset}).
    """
    w1_rows = ((input_dim + 7) // 8) * 8
    spec = [
        ("w1", params["w1"], w1_rows),   # (input_dim, hidden)  -> rows = input_dim
        ("b1", params["b1"], 8),
        ("w2", params["w2"], _LANES),    # contraction dim padded to 128 rows
        ("b2", params["b2"], 8),
        ("w3", params["w3"], _LANES),
        ("b3", params["b3"], 8),
        ("wh", params["w_heads"], _LANES),
        ("bh", params["b_heads"], 8),
    ]
    offsets, blocks, row = {}, [], 0
    for name, arr, rows in spec:
        offsets[name] = row
        blocks.append(_pad_block(arr, rows))
        row += rows
    slab = jnp.concatenate(blocks, axis=0)          # (432, 128) for these sizes
    return slab, offsets


# ----------------------------------------------------------------------------
# Wrapper
# ----------------------------------------------------------------------------
def mlp_context_encoder_forward(x, slab, offsets, *, input_dim, output_dim):
    """x: (seq_num, seq_len, input_dim) f32 -> (mean, log_std), each (1, output_dim).

    Assumes all trajectories share seq_len (same assumption as sample_contexts).
    """
    seq_num, seq_len, input_dim_x = x.shape
    assert input_dim_x == input_dim
    n_tokens = seq_num * seq_len
    x_flat = x.reshape(n_tokens, input_dim)

    kernel = functools.partial(_mlp_context_encoder_kernel, input_dim,
                               1.0 / float(seq_len), seq_num, offsets)

    flops = (2 * n_tokens * input_dim * _LANES       # x @ w1
             + n_tokens * _LANES                     # pooling sum
             + 3 * 2 * _LANES * _LANES)              # three (1,128)x(128,128) matmuls
    bytes_accessed = 4 * (x_flat.size + slab.size + _LANES)

    vmem = pl.BlockSpec(memory_space=pltpu.MemorySpace.VMEM)
    y = pl.pallas_call(
        kernel,
        out_shape=jax.ShapeDtypeStruct((1, _LANES), jnp.float32),
        in_specs=[vmem, vmem],
        out_specs=vmem,
        cost_estimate=pl.CostEstimate(flops=flops, transcendentals=0,
                                      bytes_accessed=bytes_accessed),
    )(x_flat, slab)

    mean = y[:, :output_dim]
    log_std = y[:, output_dim:2 * output_dim]
    return mean, log_std


# ----------------------------------------------------------------------------
# Init + pure-JAX reference
# ----------------------------------------------------------------------------
def init_params(key, input_dim, hidden_dim, inter_dim, output_dim):
    """PyTorch-style U(-1/sqrt(fan_in), 1/sqrt(fan_in)) init; weights as (in, out)."""
    keys = jax.random.split(key, 10)

    def u(kk, shape, fan_in):
        lim = 1.0 / float(fan_in) ** 0.5
        return jax.random.uniform(kk, shape, jnp.float32, -lim, lim)

    w1 = u(keys[0], (input_dim, hidden_dim), input_dim)
    b1 = u(keys[1], (1, hidden_dim), input_dim)
    w2 = u(keys[2], (hidden_dim, inter_dim), hidden_dim)
    b2 = u(keys[3], (1, inter_dim), hidden_dim)
    w3 = u(keys[4], (inter_dim, hidden_dim), inter_dim)
    b3 = u(keys[5], (1, hidden_dim), inter_dim)
    w_mean = u(keys[6], (hidden_dim, output_dim), hidden_dim)
    b_mean = u(keys[7], (1, output_dim), hidden_dim)
    w_log_sig = u(keys[8], (hidden_dim, output_dim), hidden_dim)
    b_log_sig = u(keys[9], (1, output_dim), hidden_dim)

    # Host-side head fusion: one matmul for both heads inside the kernel.
    w_heads = jnp.concatenate([w_mean, w_log_sig], axis=1)       # (hidden, 2*out)
    b_heads = jnp.concatenate([b_mean, b_log_sig], axis=1)       # (1, 2*out)

    return dict(w1=w1, b1=b1, w2=w2, b2=b2, w3=w3, b3=b3,
                w_mean=w_mean, b_mean=b_mean,
                w_log_sig=w_log_sig, b_log_sig=b_log_sig,
                w_heads=w_heads, b_heads=b_heads)


def reference_forward(seq_list, params):
    """Pure-JAX mirror of the PyTorch forward (list of trajectories)."""
    embeddings = []
    for s in seq_list:                                           # (seq_len, input_dim)
        h1 = jnp.maximum(s @ params["w1"] + params["b1"], 0.0)
        e = h1 @ params["w2"] + params["b2"]                     # (seq_len, inter)
        embeddings.append(jnp.mean(e, axis=0, keepdims=True))
    embeddings = jnp.concatenate(embeddings, axis=0)             # (seq_num, inter)
    embedding = jnp.sum(embeddings, axis=0, keepdims=True)       # (1, inter)
    hid = jnp.maximum(embedding @ params["w3"] + params["b3"], 0.0)
    mean = hid @ params["w_mean"] + params["b_mean"]
    log_std = hid @ params["w_log_sig"] + params["b_log_sig"]
    return mean, log_std


if __name__ == "__main__":
    INPUT_DIM = 16
    HIDDEN_DIM = 32
    INTER_DIM = 24
    OUTPUT_DIM = 8
    SEQ_NUM = 4     # number of trajectories in `seq`
    SEQ_LEN = 8     # tokens per trajectory (equal lengths, as in sample_contexts)

    root = jax.random.PRNGKey(0)
    kx, kp = jax.random.split(root)
    x = jax.random.normal(kx, (SEQ_NUM, SEQ_LEN, INPUT_DIM), jnp.float32)
    params = init_params(kp, INPUT_DIM, HIDDEN_DIM, INTER_DIM, OUTPUT_DIM)
    slab, offsets = pack_param_slab(params, INPUT_DIM)

    mean, log_std = mlp_context_encoder_forward(
        x, slab, offsets, input_dim=INPUT_DIM, output_dim=OUTPUT_DIM)
    mean = jax.block_until_ready(mean)
    log_std = jax.block_until_ready(log_std)
    assert mean.shape == (1, OUTPUT_DIM)
    assert log_std.shape == (1, OUTPUT_DIM)

    ref_mean, ref_log_std = reference_forward([x[i] for i in range(SEQ_NUM)], params)
    assert jnp.allclose(mean, ref_mean, atol=1e-5, rtol=1e-5)
    assert jnp.allclose(log_std, ref_log_std, atol=1e-5, rtol=1e-5)

    print("KERNEL_OK")
</pallas_src>

<mosaic_0001>
module attributes {stable_mosaic.version = 11 : i64} {
  func.func @_mlp_context_encoder_kernel(%arg0: memref<32x16xf32, #tpu.memory_space<vmem>>, %arg1: memref<432x128xf32, #tpu.memory_space<vmem>>, %arg2: memref<1x128xf32, #tpu.memory_space<vmem>>) attributes {dimension_semantics = [], scalar_prefetch = 0 : i64, scratch_operands = 0 : i64, tpu.core_type = #tpu.core_type<tc>} {
    %c0 = arith.constant 0 : index
    %c0_0 = arith.constant 0 : index
    %0 = vector.load %arg0[%c0, %c0_0] : memref<32x16xf32, #tpu.memory_space<vmem>>, vector<32x16xf32>
    %c0_1 = arith.constant 0 : index
    %c0_2 = arith.constant 0 : index
    %1 = vector.load %arg1[%c0_1, %c0_2] : memref<432x128xf32, #tpu.memory_space<vmem>>, vector<16x128xf32>
    %c16 = arith.constant 16 : index
    %c0_3 = arith.constant 0 : index
    %2 = vector.load %arg1[%c16, %c0_3] : memref<432x128xf32, #tpu.memory_space<vmem>>, vector<1x128xf32>
    %c24 = arith.constant 24 : index
    %c0_4 = arith.constant 0 : index
    %3 = vector.load %arg1[%c24, %c0_4] : memref<432x128xf32, #tpu.memory_space<vmem>>, vector<128x128xf32>
    %c152 = arith.constant 152 : index
    %c0_5 = arith.constant 0 : index
    %4 = vector.load %arg1[%c152, %c0_5] : memref<432x128xf32, #tpu.memory_space<vmem>>, vector<1x128xf32>
    %c160 = arith.constant 160 : index
    %c0_6 = arith.constant 0 : index
    %5 = vector.load %arg1[%c160, %c0_6] : memref<432x128xf32, #tpu.memory_space<vmem>>, vector<128x128xf32>
    %c288 = arith.constant 288 : index
    %c0_7 = arith.constant 0 : index
    %6 = vector.load %arg1[%c288, %c0_7] : memref<432x128xf32, #tpu.memory_space<vmem>>, vector<1x128xf32>
    %c296 = arith.constant 296 : index
    %c0_8 = arith.constant 0 : index
    %7 = vector.load %arg1[%c296, %c0_8] : memref<432x128xf32, #tpu.memory_space<vmem>>, vector<128x128xf32>
    %c424 = arith.constant 424 : index
    %c0_9 = arith.constant 0 : index
    %8 = vector.load %arg1[%c424, %c0_9] : memref<432x128xf32, #tpu.memory_space<vmem>>, vector<1x128xf32>
    %cst = arith.constant dense<0.000000e+00> : vector<32x128xf32>
    %9 = tpu.matmul %0, %1, %cst {dimension_numbers = #tpu.dot_dimension_numbers<[1], [0], [0], [1], [0, 0, 1, 1], [], []>} : vector<32x16xf32>, vector<16x128xf32>, vector<32x128xf32> -> vector<32x128xf32>
    %10 = vector.broadcast %2 : vector<1x128xf32> to vector<32x128xf32>
    %11 = arith.addf %9, %10 : vector<32x128xf32>
    %cst_10 = arith.constant 0.000000e+00 : f32
    %12 = vector.broadcast %cst_10 : f32 to vector<32x128xf32>
    %13 = arith.maximumf %11, %12 : vector<32x128xf32>
    %cst_11 = arith.constant dense<0.000000e+00> : vector<128xf32>
    %14 = vector.multi_reduction <add>, %13, %cst_11 [0] : vector<32x128xf32> to vector<128xf32>
    %15 = vector.shape_cast %14 : vector<128xf32> to vector<1x128xf32>
    %cst_12 = arith.constant dense<0.000000e+00> : vector<1x128xf32>
    %16 = tpu.matmul %15, %3, %cst_12 {dimension_numbers = #tpu.dot_dimension_numbers<[1], [0], [0], [1], [0, 0, 1, 1], [], []>} : vector<1x128xf32>, vector<128x128xf32>, vector<1x128xf32> -> vector<1x128xf32>
    %cst_13 = arith.constant 1.250000e-01 : f32
    %17 = vector.broadcast %cst_13 : f32 to vector<1x128xf32>
    %18 = arith.mulf %16, %17 : vector<1x128xf32>
    %cst_14 = arith.constant 4.000000e+00 : f32
    %19 = vector.broadcast %cst_14 : f32 to vector<1x128xf32>
    %20 = arith.mulf %4, %19 : vector<1x128xf32>
    %21 = arith.addf %18, %20 : vector<1x128xf32>
    %cst_15 = arith.constant dense<0.000000e+00> : vector<1x128xf32>
    %22 = tpu.matmul %21, %5, %cst_15 {dimension_numbers = #tpu.dot_dimension_numbers<[1], [0], [0], [1], [0, 0, 1, 1], [], []>} : vector<1x128xf32>, vector<128x128xf32>, vector<1x128xf32> -> vector<1x128xf32>
    %23 = arith.addf %22, %6 : vector<1x128xf32>
    %cst_16 = arith.constant 0.000000e+00 : f32
    %24 = vector.broadcast %cst_16 : f32 to vector<1x128xf32>
    %25 = arith.maximumf %23, %24 : vector<1x128xf32>
    %cst_17 = arith.constant dense<0.000000e+00> : vector<1x128xf32>
    %26 = tpu.matmul %25, %7, %cst_17 {dimension_numbers = #tpu.dot_dimension_numbers<[1], [0], [0], [1], [0, 0, 1, 1], [], []>} : vector<1x128xf32>, vector<128x128xf32>, vector<1x128xf32> -> vector<1x128xf32>
    %27 = arith.addf %26, %8 : vector<1x128xf32>
    %c0_18 = arith.constant 0 : index
    %c0_19 = arith.constant 0 : index
    %28 = vector.load %arg2[%c0_18, %c0_19] : memref<1x128xf32, #tpu.memory_space<vmem>>, vector<1x128xf32>
    tpu.vector_store %arg2[%c0_18, %c0_19], %27 {strides = array<i32>} : memref<1x128xf32, #tpu.memory_space<vmem>>, vector<1x128xf32>,
    return
  }
}

</mosaic_0001>

<bundles_post_ra>
// kernel: tpu_custom_call.1
= control target key start
LH: loop header
LB: loop body
LE: loop exit
PB: predicated region body
PF: predicated region fallthrough
CT: control target
= control target key end

     0   :  { %7 = vsyncpa [#allocation3], 0  ;;  %s829_s0 = inlined_call_operand.vmem [shape: f32[32,16], index: 0, kind: input, shape index: {}]   ;;  %s830_s1 = inlined_call_operand.hbm [shape: f32[432,128], index: 1, kind: input, shape index: {}]   ;;  %s831_s2 = inlined_call_operand.hbm [shape: f32[1,128], index: 2, kind: output, shape index: {}]  }
   0x1   :  { %8 = vsyncpa [#allocation4], 0  ;;  %s737_s9 = smov [#allocation2]   ;;  %s689_s13 = scalar_lea.hbm %s830_s1, 6912 }
   0x2   :  { %s16_s10 = sshll.u32 %s737_s9, 4  ;;  %p690_p0 = scmp.ne.s32.totalorder %s830_s1, %s689_s13  ;;  %s17_s10 = int_to_ptr.vmem [resolvable:$true] %s16_s10 }
   0x3   :  { %p693_p1 = scmp.lt.u32.totalorder %s689_s13, %s830_s1 }
   0x5   :  { %p695_p2 = pnand %p693_p1, %p690_p0 }
   0x7   :  { %698 = shalt.err (!%p695_p2)
}
   0x8   :  { %s699_s18 = scalar_lea.vmem %s17_s10, 6912  ;;  %p704_p4 = scmp.lt.s32.totalorder %s17_s10, %s17_s10 }
   0x9   :  { %p700_p3 = scmp.ne.s32.totalorder %s17_s10, %s699_s18  ;;  %p705_p5 = scmp.lt.s32.totalorder %s699_s18, %s699_s18 }
   0xb   :  { %p706_p6 = por %p705_p5, %p704_p4 }
   0xd   :  { %p707_p7 = pnand %p706_p6, %p700_p3 }
   0xf   :  { %710 = shalt.err (!%p707_p7)
}
  0x10   :  { %s738_s19 = smov 128   ;;  %s739_s20 = smov 8  }
  0x11   :  { %22 = dma.hbm_to_vmem [thread:$0]  %s830_s1, 6912, %s17_s10, [#allocation3], %s738_s19, %s738_s19, %s739_s20  }
  0x12   :  { %733 = dma.done.wait [#allocation3], 6912  }
  0x13   :  { %734 = vsyncadd [#allocation3], 4294960384  ;;  %v740_v0 = vmov 0.0|0.0   ;;  %vm88_vm0 = vcmask 130048   ;;  %v30_v1 = vld [vmem:[#allocation2] sm:$0xff]  ;;  %v31_v2 = vld [vmem:[#allocation2 + $0x8] sm:$0xff] }
  0x14   :  { %610 = vmatprep.subr.bf16.mxu1 %v740_v0  ;;  %v26_v3 = vld [vmem:[%s829_s0] sm:$0xff]  ;;  %v606_v4 = vpack.c.bf16 %v31_v2, %v30_v1  ;;  %v33_v5 = vld [vmem:[#allocation2 + $0x18] sm:$0xff]  ;;  %v35_v7 = vld [vmem:[#allocation2 + $0x28] sm:$0xff]  ;;  %vm741_vm1 = vmmov 0   ;;  %v742_v31 = vmov 0.0  }
  0x15   :  { %495 = vmatprep.mubr.msk.f32.mxu0 %vm88_vm0, %v26_v3  ;;  %v34_v6 = vld [vmem:[#allocation2 + $0x20] sm:$0xff]  ;;  %v36_v9 = vld [vmem:[#allocation2 + $0x30] sm:$0xff]  ;;  %v27_v10 = vld [vmem:[%s829_s0 + $0x8] sm:$0xff]  ;;  %533 = vmatprep.mubr.msk.f32.mxu1 %vm741_vm1, %v742_v31 }
  0x16   :  { %607 = vmatprep.subr.bf16.mxu0 %v606_v4  ;;  %v611_v8 = vpack.c.bf16 %v34_v6, %v33_v5  ;;  %v28_v11 = vld [vmem:[%s829_s0 + $0x10] sm:$0xff]  ;;  %v614_v12 = vpack.c.bf16 %v36_v9, %v35_v7  ;;  %v29_v13 = vld [vmem:[%s829_s0 + $0x18] sm:$0xff]  ;;  %v38_v15 = vld [vmem:[#allocation2 + $0x40] sm:$0xff]  ;;  %s743_s0 = smov [#allocation5]  }
  0x17   :  { %609 = vmatpush3.bf16.msra.mxu0 %v606_v4  ;;  %v37_v14 = vld [vmem:[#allocation2 + $0x38] sm:$0xff]  ;;  %v39_v17 = vld [vmem:[#allocation2 + $0x48] sm:$0xff]  ;;  %v40_v18 = vld [vmem:[#allocation2 + $0x50] sm:$0xff]  ;;  %s420_s30 = sshll.u32 %s743_s0, 4  ;;  %s421_s30 = int_to_ptr.vmem [resolvable:$true] %s420_s30 }
  0x18   :  { %612 = vmatpush3.bf16.msra.mxu1 %v611_v8  ;;  %634 = vmatprep.subr.bf16.mxu0 %v740_v0  ;;  %v617_v16 = vpack.c.bf16 %v38_v15, %v37_v14  ;;  %v620_v19 = vpack.c.bf16 %v40_v18, %v39_v17  ;;  %v41_v20 = vld [vmem:[#allocation2 + $0x58] sm:$0xff]  ;;  %v42_v21 = vld [vmem:[#allocation2 + $0x60] sm:$0xff]  ;;  %v43_v23 = vld [vmem:[#allocation2 + $0x68] sm:$0xff]  ;;  %s711_s3 = scalar_lea.vmem %s421_s30, 16  ;;  %s715_s4 = scalar_lea.vmem %s421_s30, 32 }
  0x19   :  { %613 = vmatprep.subr.bf16.mxu1 %v740_v0  ;;  %v623_v22 = vpack.c.bf16 %v42_v21, %v41_v20  ;;  %v44_v24 = vld [vmem:[#allocation2 + $0x70] sm:$0xff]  ;;  %v45_v26 = vld [vmem:[#allocation2 + $0x78] sm:$0xff]  ;;  %v46_v27 = vld [vmem:[#allocation2 + $0x80] sm:$0xff]  ;;  %p712_p8 = scmp.ne.s32.totalorder %s421_s30, %s711_s3  ;;  %p716_p9 = scmp.lt.s32.totalorder %s421_s30, %s421_s30 }
  0x1a   :  { %496 = vmatmul.mubr.msk.f32.vlgmr.msra.gmra.mrb[0].mxu0 %vm88_vm0, %v27_v10  ;;  %v626_v25 = vpack.c.bf16 %v44_v24, %v43_v23  ;;  %v47_v28 = vld [vmem:[#allocation2 + $0x88] sm:$0xff]  ;;  %v629_v29 = vpack.c.bf16 %v46_v27, %v45_v26  ;;  %v48_v30 = vld [vmem:[#allocation2 + $0x90] sm:$0xff]  ;;  %v50_v33 = vld [vmem:[#allocation2 + $0xa0] sm:$0xff]  ;;  %p717_p10 = scmp.lt.s32.totalorder %s715_s4, %s711_s3 }
  0x1b   :  { %498 = vmatprep.mubr.msk.f32.mxu0 %vm88_vm0, %v28_v11  ;;  %v632_v32 = vpack.c.bf16 %v48_v30, %v47_v28  ;;  %v51_v34 = vld [vmem:[#allocation2 + $0xa8] sm:$0xff]  ;;  %v52_v35 = vld [vmem:[#allocation2 + $0xb0] sm:$0xff]  ;;  %v53_v37 = vld [vmem:[#allocation2 + $0xb8] sm:$0xff] }
  0x1c   :  { %615 = vmatpush3.bf16.msra.mxu1 %v614_v12  ;;  %v635_v36 = vpack.c.bf16 %v51_v34, %v50_v33  ;;  %v638_v38 = vpack.c.bf16 %v53_v37, %v52_v35  ;;  %v54_v39 = vld [vmem:[#allocation2 + $0xc0] sm:$0xff]  ;;  %v55_v40 = vld [vmem:[#allocation2 + $0xc8] sm:$0xff]  ;;  %v56_v42 = vld [vmem:[#allocation2 + $0xd0] sm:$0xff]  ;;  %p718_p11 = por %p717_p10, %p716_p9 }
  0x1d   :  { %616 = vmatprep.subr.bf16.mxu1 %v740_v0  ;;  %v641_v41 = vpack.c.bf16 %v55_v40, %v54_v39  ;;  %v57_v43 = vld [vmem:[#allocation2 + $0xd8] sm:$0xff]  ;;  %v58_v45 = vld [vmem:[#allocation2 + $0xe0] sm:$0xff]  ;;  %v59_v46 = vld [vmem:[#allocation2 + $0xe8] sm:$0xff] }
  0x1e   :  { %499 = vmatmul.mubr.msk.f32.gmra.mrb[2].mxu0 %vm88_vm0, %v29_v13  ;;  %v644_v44 = vpack.c.bf16 %v57_v43, %v56_v42  ;;  %v647_v47 = vpack.c.bf16 %v59_v46, %v58_v45  ;;  %v60_v48 = vld [vmem:[#allocation2 + $0xf0] sm:$0xff]  ;;  %v61_v49 = vld [vmem:[#allocation2 + $0xf8] sm:$0xff]  ;;  %v62_v51 = vld [vmem:[#allocation2 + $0x100] sm:$0xff]  ;;  %p719_p12 = pnand %p718_p11, %p712_p8 }
  0x1f   :  { %568 = vmatprep.mubr.msk.f32.mxu0 %vm741_vm1, %v742_v31  ;;  %636 = vmatpush3.bf16.msra.mxu0 %v635_v36  ;;  %v650_v50 = vpack.c.bf16 %v61_v49, %v60_v48  ;;  %v63_v52 = vld [vmem:[#allocation2 + $0x108] sm:$0xff]  ;;  %v429_v54 = vld [vmem:[#allocation2 + $0x10] ss:$0 sm:$0xff]  ;;  %v65_v14 = vld [vmem:[#allocation2 + $0x118] sm:$0xff] }
  0x20   :  { %618 = vmatpush3.bf16.msra.mxu1 %v617_v16  ;;  %637 = vmatprep.subr.bf16.mxu0 %v740_v0  ;;  %v653_v53 = vpack.c.bf16 %v63_v52, %v62_v51  ;;  %v64_v13 = vld [vmem:[#allocation2 + $0x110] sm:$0xff]  ;;  %v67_v16 = vld [vmem:[#allocation2 + $0x128] sm:$0xff]  ;;  %v69_v18 = vld [vmem:[#allocation2 + $0x138] sm:$0xff] }
  0x21   :  { %619 = vmatprep.subr.bf16.mxu1 %v740_v0  ;;  %v656_v15 = vpack.c.bf16 %v65_v14, %v64_v13  ;;  %v68_v17 = vld [vmem:[#allocation2 + $0x130] sm:$0xff]  ;;  %v70_v20 = vld [vmem:[#allocation2 + $0x140] sm:$0xff]  ;;  %v75_v28 = vld [vmem:[#allocation2 + $0x168] sm:$0xff] }
  0x22   :  { %v662_v21 = vpack.c.bf16 %v70_v20, %v69_v18  ;;  %v72_v23 = vld [vmem:[#allocation2 + $0x150] sm:$0xff]  ;;  %v74_v26 = vld [vmem:[#allocation2 + $0x160] sm:$0xff]  ;;  %v79_v34 = vld [vmem:[#allocation2 + $0x188] sm:$0xff] }
  0x23   :  { %639 = vmatpush3.bf16.msra.mxu0 %v638_v38  ;;  %v80_v35 = vld [vmem:[#allocation2 + $0x190] sm:$0xff]  ;;  %v49_v37 = vld [vmem:[#allocation2 + $0x98] sm:$0x1]  ;;  %v66_v46 = vld [vmem:[#allocation2 + $0x120] sm:$0x1] }
  0x24   :  { %621 = vmatpush3.bf16.msra.mxu1 %v620_v19  ;;  %640 = vmatprep.subr.bf16.mxu0 %v740_v0  ;;  %v659_v19 = vpack.c.bf16 %v68_v17, %v67_v16  ;;  %v677_v36 = vpack.c.bf16 %v80_v35, %v79_v34  ;;  %v270_v38 = vmul.f32 4.0, %v49_v37  ;;  %v81_v43 = vld [vmem:[#allocation2 + $0x198] sm:$0xff]  ;;  %v83_v51 = vld [vmem:[#allocation2 + $0x1a8] sm:$0x1] }
  0x25   :  { %622 = vmatprep.subr.bf16.mxu1 %v740_v0 }
  0x27   :  { %642 = vmatpush3.bf16.msra.mxu0 %v641_v41 }
  0x28   :  { %624 = vmatpush3.bf16.msra.mxu1 %v623_v22  ;;  %643 = vmatprep.subr.bf16.mxu0 %v740_v0  ;;  %v71_v22 = vld [vmem:[#allocation2 + $0x148] sm:$0xff] }
  0x29   :  { %625 = vmatprep.subr.bf16.mxu1 %v740_v0  ;;  %v665_v24 = vpack.c.bf16 %v72_v23, %v71_v22 }
  0x2b   :  { %645 = vmatpush3.bf16.msra.mxu0 %v644_v44  ;;  %v82_v44 = vld [vmem:[#allocation2 + $0x1a0] sm:$0xff] }
  0x2c   :  { %627 = vmatpush3.bf16.msra.mxu1 %v626_v25  ;;  %646 = vmatprep.subr.bf16.mxu0 %v740_v0  ;;  %v73_v25 = vld [vmem:[#allocation2 + $0x158] sm:$0xff]  ;;  %v680_v45 = vpack.c.bf16 %v82_v44, %v81_v43 }
  0x2d   :  { %628 = vmatprep.subr.bf16.mxu1 %v740_v0  ;;  %v668_v27 = vpack.c.bf16 %v74_v26, %v73_v25 }
  0x2f   :  { %648 = vmatpush3.bf16.msra.mxu0 %v647_v47 }
  0x30   :  { %630 = vmatpush3.bf16.msra.mxu1 %v629_v29  ;;  %649 = vmatprep.subr.bf16.mxu0 %v740_v0  ;;  %v76_v29 = vld [vmem:[#allocation2 + $0x170] sm:$0xff] }
  0x31   :  { %631 = vmatprep.subr.bf16.mxu1 %v740_v0  ;;  %v671_v30 = vpack.c.bf16 %v76_v29, %v75_v28 }
  0x33   :  { %651 = vmatpush3.bf16.msra.mxu0 %v650_v50 }
  0x34   :  { %633 = vmatpush3.bf16.msra.mxu1 %v632_v32  ;;  %652 = vmatprep.subr.bf16.mxu0 %v740_v0  ;;  %v78_v32 = vld [vmem:[#allocation2 + $0x180] sm:$0xff] }
  0x35   :  { %658 = vmatprep.subr.bf16.mxu1 %v740_v0 }
  0x37   :  { %654 = vmatpush3.bf16.msra.mxu0 %v653_v53 }
  0x38   :  { %655 = vmatprep.subr.bf16.mxu0 %v740_v0 }
  0x3b   :  { %657 = vmatpush3.bf16.msra.mxu0 %v656_v15 }
  0xed   :  { %v497_v55 = vpop.f32.mrb[0].mxu0 }
  0xee   :  { %v173_v56 = vadd.f32 %v497_v55, %v429_v54  ;;  %v167_v57 = vpop.f32.mrb[1].mxu0 }
  0xef   :  { %v168_v58 = vadd.f32 %v429_v54, %v167_v57 }
  0xf0   :  { %v187_v59 = vmax.f32 %v173_v56, 0.0 }
  0xf1   :  { %v186_v60 = vmax.f32 %v168_v58, 0.0  ;;  %v500_v61 = vpop.f32.mrb[2].mxu0 }
  0xf2   :  { %v177_v62 = vpop.f32.mrb[3].mxu0  ;;  %v183_v1 = vadd.f32 %v500_v61, %v429_v54 }
  0xf3   :  { %v190_v63 = vadd.f32 %v187_v59, %v186_v60  ;;  %v178_v2 = vadd.f32 %v429_v54, %v177_v62 }
  0xf4   :  { %v189_v4 = vmax.f32 %v183_v1, 0.0 }
  0xf5   :  { %v188_v3 = vmax.f32 %v178_v2, 0.0 }
  0xf7   :  { %v191_v5 = vadd.f32 %v190_v63, %v188_v3 }
  0xf9   :  { %v192_v6 = vadd.f32 %v191_v5, %v189_v4 }
  0xfb   :  { %v193_v7 = vrot.slane %v192_v6, 4 }
  0xfd   :  { %v194_v8 = vadd.f32 %v193_v7, %v192_v6 }
  0xff   :  { %v195_v9 = vrot.slane %v194_v8, 2 }
 0x101   :  { %v196_v10 = vadd.f32 %v195_v9, %v194_v8 }
 0x103   :  { %v197_v11 = vrot.slane %v196_v10, 1 }
 0x105   :  { %v198_v12 = vadd.f32 %v197_v11, %v196_v10 }
 0x107   :  { %534 = vmatmul.mubr.f32.vlgmr.msra.gmra.mrb[0].mxu1 %v198_v12 }
 0x108   :  { %603 = vmatprep.mubr.msk.f32.mxu1 %vm741_vm1, %v742_v31  ;;  %660 = vmatpush3.bf16.msra.mxu1 %v659_v19  ;;  %v77_v31 = vld [vmem:[#allocation2 + $0x178] sm:$0xff] }
 0x109   :  { %661 = vmatprep.subr.bf16.mxu1 %v740_v0  ;;  %v674_v33 = vpack.c.bf16 %v78_v32, %v77_v31 }
 0x10c   :  { %663 = vmatpush3.bf16.msra.mxu1 %v662_v21 }
 0x10d   :  { %664 = vmatprep.subr.bf16.mxu1 %v740_v0 }
 0x110   :  { %666 = vmatpush3.bf16.msra.mxu1 %v665_v24 }
 0x111   :  { %667 = vmatprep.subr.bf16.mxu1 %v740_v0 }
 0x114   :  { %669 = vmatpush3.bf16.msra.mxu1 %v668_v27 }
 0x115   :  { %670 = vmatprep.subr.bf16.mxu1 %v740_v0 }
 0x118   :  { %672 = vmatpush3.bf16.msra.mxu1 %v671_v30 }
 0x119   :  { %673 = vmatprep.subr.bf16.mxu1 %v740_v0 }
 0x11c   :  { %675 = vmatpush3.bf16.msra.mxu1 %v674_v33 }
 0x11d   :  { %676 = vmatprep.subr.bf16.mxu1 %v740_v0 }
 0x120   :  { %678 = vmatpush3.bf16.msra.mxu1 %v677_v36 }
 0x121   :  { %679 = vmatprep.subr.bf16.mxu1 %v740_v0 }
 0x124   :  { %681 = vmatpush3.bf16.msra.mxu1 %v680_v45 }
 0x1da   :  { %v265_v39 = vpop.f32.mrb[0].mxu1 }
 0x1db   :  { %v269_v40 = vmul.f32 0.125, %v265_v39  ;;  %v535_v41 = vpop.f32.mrb[1].mxu1 }
 0x1dd   :  { %v271_v42 = vadd.f32 %v270_v38, %v269_v40 }
 0x1df   :  { %569 = vmatmul.mubr.f32.vlgmr.msra.gmra.mrb[4].mxu0 %v271_v42 }
 0x2b2   :  { %v338_v47 = vpop.f32.mrb[4].mxu0 }
 0x2b3   :  { %v339_v48 = vadd.f32 %v338_v47, %v66_v46  ;;  %v570_v49 = vpop.f32.mrb[5].mxu0 }
 0x2b5   :  { %v342_v50 = vmax.f32 %v339_v48, 0.0 }
 0x2b7   :  { %604 = vmatmul.mubr.f32.vlgmr.msra.gmra.mrb[2].mxu1 %v342_v50 }
 0x38a   :  { %v409_v0 = vpop.f32.mrb[2].mxu1 }
 0x38b   :  { %v410_v52 = vadd.f32 %v409_v0, %v83_v51  ;;  %v605_v53 = vpop.f32.mrb[3].mxu1 }
 0x38d   :  { %413 = vst [vmem:[#allocation5] sm:$0x1] %v410_v52 }
 0x38e   :  { %722 = shalt.err (!%p719_p12)
}
 0x38f   :  { %s723_s7 = scalar_lea.hbm %s831_s2, 16 }
 0x390   :  { %p724_p13 = scmp.ne.s32.totalorder %s831_s2, %s723_s7  ;;  %p727_p0 = scmp.lt.u32.totalorder %s723_s7, %s831_s2 }
 0x392   :  { %p729_p1 = pnand %p727_p0, %p724_p13 }
 0x394   :  { %732 = shalt.err (!%p729_p1)
}
 0x395   :  { %423 = dma.vmem_to_hbm [thread:$0]  %s421_s30, 16, %s831_s2, [#allocation4]  }
 0x396   :  { %735 = dma.done.wait [#allocation4], 16  }
 0x397   :  { %736 = vsyncadd [#allocation4], 4294967280 }
 0x398   :  { %427 = vsyncpa [#allocation3], 1 }
 0x399   :  { %428 = vsyncpa [#allocation4], 1 }

</bundles_post_ra>
